<compile_context>
chip_gen: v6e
topology: v6e:2x2x1
jax: 0.10.0
libtpu: 0.0.40
codegen_flags: <defaults>
</compile_context>

<pallas_src>
import jax
import jax.numpy as jnp
from jax.experimental import pallas as pl
from jax.experimental.pallas import tpu as pltpu

CLAMP_A = 0.5208095618495932   # Hardtanh(0.0, A)
CLAMP_B = 1.4692311549774013   # Hardtanh(A,   B)

# Hardtanh(0, A) followed by Hardtanh(A, B) composes (the intervals meet at A)
# into a single clamp with bounds [max(0, A), min(A, B)] == [A, A].
FUSED_LO = max(0.0, CLAMP_A)
FUSED_HI = min(CLAMP_A, CLAMP_B)


def _linear_double_clamp_kernel(x_ref, w_ref, b_ref, o_ref):
    # x_ref: (B, K) activations, w_ref: (K, N) MXU-native RHS, b_ref: (1, N).
    y = jnp.dot(x_ref[...], w_ref[...], preferred_element_type=jnp.float32)
    y = y + b_ref[...]                       # (1, N) broadcasts over rows
    # Single fused clip replacing the two stacked Hardtanh's.
    o_ref[...] = jnp.clip(y, FUSED_LO, FUSED_HI).astype(o_ref.dtype)


def linear_double_clamp(x, weight, bias):
    """x: (B, in), weight: (out, in) [PyTorch layout], bias: (out,)."""
    batch, in_f = x.shape
    out_f, in_f_w = weight.shape
    assert in_f == in_f_w and bias.shape == (out_f,)

    # One-time layout prep (constant-folds under jit when params are baked):
    # MXU-native RHS (K, N) and a 2-D bias row for in-kernel broadcasting.
    w_t = weight.T                 # (in_f, out_f)
    b2d = bias.reshape(1, out_f)   # (1, out_f)

    vmem = pl.BlockSpec(memory_space=pltpu.MemorySpace.VMEM)

    return pl.pallas_call(
        _linear_double_clamp_kernel,
        out_shape=jax.ShapeDtypeStruct((batch, out_f), x.dtype),
        in_specs=[vmem, vmem, vmem],   # whole arrays, single DMA each
        out_specs=vmem,
    )(x, w_t, b2d)


def reference(x, weight, bias):
    # Faithful un-fused reference: linear, then the two Hardtanh clamps.
    y = x @ weight.T + bias
    y = jnp.clip(y, 0.0, CLAMP_A)
    return jnp.clip(y, CLAMP_A, CLAMP_B)


if __name__ == "__main__":
    key = jax.random.PRNGKey(0)
    kx, kw, kb = jax.random.split(key, 3)

    batch, in_f, out_f = 8, 10, 10
    x = jax.random.normal(kx, (batch, in_f), dtype=jnp.float32)
    # Deterministic "Linear(10, 10)" params (PyTorch layout: weight (out, in)).
    bound = 1.0 / float(in_f) ** 0.5
    weight = jax.random.uniform(kw, (out_f, in_f), jnp.float32, -bound, bound)
    bias = jax.random.uniform(kb, (out_f,), jnp.float32, -bound, bound)

    out = linear_double_clamp(x, weight, bias)
    out = jax.block_until_ready(out)

    ref = reference(x, weight, bias)
    assert out.shape == (batch, out_f)
    assert jnp.allclose(out, ref, atol=1e-5, rtol=1e-5), "mismatch vs reference"
    print("KERNEL_OK")
</pallas_src>

<mosaic_0001>
module attributes {stable_mosaic.version = 11 : i64} {
  func.func @_linear_double_clamp_kernel(%arg0: memref<8x10xf32, #tpu.memory_space<vmem>>, %arg1: memref<10x10xf32, #tpu.memory_space<vmem>>, %arg2: memref<1x10xf32, #tpu.memory_space<vmem>>, %arg3: memref<8x10xf32, #tpu.memory_space<vmem>>) attributes {dimension_semantics = [], scalar_prefetch = 0 : i64, scratch_operands = 0 : i64, tpu.core_type = #tpu.core_type<tc>} {
    %c0 = arith.constant 0 : index
    %c0_0 = arith.constant 0 : index
    %0 = vector.load %arg0[%c0, %c0_0] : memref<8x10xf32, #tpu.memory_space<vmem>>, vector<8x10xf32>
    %c0_1 = arith.constant 0 : index
    %c0_2 = arith.constant 0 : index
    %1 = vector.load %arg1[%c0_1, %c0_2] : memref<10x10xf32, #tpu.memory_space<vmem>>, vector<10x10xf32>
    %cst = arith.constant dense<0.000000e+00> : vector<8x10xf32>
    %2 = tpu.matmul %0, %1, %cst {dimension_numbers = #tpu.dot_dimension_numbers<[1], [0], [0], [1], [0, 0, 1, 1], [], []>} : vector<8x10xf32>, vector<10x10xf32>, vector<8x10xf32> -> vector<8x10xf32>
    %c0_3 = arith.constant 0 : index
    %c0_4 = arith.constant 0 : index
    %3 = vector.load %arg2[%c0_3, %c0_4] : memref<1x10xf32, #tpu.memory_space<vmem>>, vector<1x10xf32>
    %4 = vector.broadcast %3 : vector<1x10xf32> to vector<8x10xf32>
    %5 = arith.addf %2, %4 : vector<8x10xf32>
    %cst_5 = arith.constant 0.520809591 : f32
    %cst_6 = arith.constant 0.520809591 : f32
    %6 = vector.broadcast %cst_5 : f32 to vector<8x10xf32>
    %7 = arith.maximumf %6, %5 : vector<8x10xf32>
    %8 = vector.broadcast %cst_6 : f32 to vector<8x10xf32>
    %9 = arith.minimumf %8, %7 : vector<8x10xf32>
    %c0_7 = arith.constant 0 : index
    %c0_8 = arith.constant 0 : index
    %10 = vector.load %arg3[%c0_7, %c0_8] : memref<8x10xf32, #tpu.memory_space<vmem>>, vector<8x10xf32>
    tpu.vector_store %arg3[%c0_7, %c0_8], %9 {strides = array<i32>} : memref<8x10xf32, #tpu.memory_space<vmem>>, vector<8x10xf32>,
    return
  }
}

</mosaic_0001>

<bundles_post_ra>
// kernel: tpu_custom_call.1
= control target key start
LH: loop header
LB: loop body
LE: loop exit
PB: predicated region body
PF: predicated region fallthrough
CT: control target
= control target key end

     0   :  { %8 = vsyncpa [#allocation3], 0  ;;  %s273_s0 = inlined_call_operand.hbm [shape: f32[8,10], index: 0, kind: input, shape index: {}]   ;;  %s274_s1 = inlined_call_operand.hbm [shape: f32[10,10], index: 1, kind: input, shape index: {}]   ;;  %s275_s2 = inlined_call_operand.vmem [shape: f32[1,10], index: 2, kind: input, shape index: {}]   ;;  %s276_s3 = inlined_call_operand.hbm [shape: f32[8,10], index: 3, kind: output, shape index: {}]  }
   0x1   :  { %9 = vsyncpa [#allocation6], 0 }
   0x2   :  { %10 = vsyncpa [#allocation4], 0  ;;  %s234_s12 = smov [#allocation2]   ;;  %s235_s14 = smov [#allocation5]  }
   0x3   :  { %s17_s13 = sshll.u32 %s234_s12, 4  ;;  %s26_s15 = sshll.u32 %s235_s14, 4  ;;  %s18_s13 = int_to_ptr.vmem [resolvable:$true] %s17_s13  ;;  %s27_s15 = int_to_ptr.vmem [resolvable:$true] %s26_s15 }
   0x4   :  { %s176_s16 = scalar_lea.vmem %s18_s13, 128  ;;  %p181_p1 = scmp.lt.s32.totalorder %s18_s13, %s18_s13 }
   0x5   :  { %p177_p0 = scmp.ne.s32.totalorder %s18_s13, %s176_s16  ;;  %p182_p2 = scmp.lt.s32.totalorder %s176_s16, %s176_s16 }
   0x7   :  { %p183_p3 = por %p182_p2, %p181_p1 }
   0x9   :  { %p184_p4 = pnand %p183_p3, %p177_p0 }
   0xb   :  { %187 = shalt.err (!%p184_p4)
}
   0xc   :  { %20 = dma.hbm_to_vmem [thread:$0]  %s273_s0, 128, %s18_s13, [#allocation3]  }
   0xd   :  { %s196_s19 = scalar_lea.vmem %s27_s15, 256  ;;  %p201_p6 = scmp.lt.s32.totalorder %s27_s15, %s27_s15 }
   0xe   :  { %p197_p5 = scmp.ne.s32.totalorder %s27_s15, %s196_s19  ;;  %p202_p7 = scmp.lt.s32.totalorder %s196_s19, %s196_s19 }
  0x10   :  { %p203_p8 = por %p202_p7, %p201_p6 }
  0x12   :  { %p204_p9 = pnand %p203_p8, %p197_p5 }
  0x14   :  { %207 = shalt.err (!%p204_p9)
}
  0x15   :  { %s236_s20 = smov 128   ;;  %s237_s21 = smov 8  }
  0x16   :  { %32 = dma.hbm_to_vmem [thread:$0]  %s274_s1, 256, %s27_s15, [#allocation6], %s236_s20, %s236_s20, %s237_s21  }
  0x17   :  { %228 = dma.done.wait [#allocation3], 128  }
  0x18   :  { %229 = vsyncadd [#allocation3], 4294967168 }
  0x19   :  { %230 = dma.done.wait [#allocation6], 256  }
  0x1a   :  { %231 = vsyncadd [#allocation6], 4294967040  ;;  %v238_v0 = vmov 0.0   ;;  %vm239_vm0 = vmmov 0   ;;  %vm55_vm1 = vcmask 1041408   ;;  %v42_v2 = vld [vmem:[#allocation5] sm:$0xff] }
  0x1b   :  { %154 = vmatprep.subr.mxu0 %v238_v0  ;;  %158 = vmatprep.mubr.msk.f32.mxu0 %vm239_vm0, %v238_v0  ;;  %v43_v1 = vld [vmem:[#allocation5 + $0x8] sm:$0x3]  ;;  %v41_v3 = vld [vmem:[#allocation2] sm:$0xff]  ;;  %vm51_vm2 = vcmask 80896   ;;  %s240_s1 = smov [#allocation7]  }
  0x1c   :  { %155 = vmatpush3.msk.msra.mxu0 %vm55_vm1, %v43_v1  ;;  %v148_v4 = vld [vmem:[%s275_s2] ss:$0 sm:$0xff]  ;;  %s138_s25 = sshll.u32 %s240_s1, 4  ;;  %s139_s25 = int_to_ptr.vmem [resolvable:$true] %s138_s25 }
  0x1d   :  { %156 = vmatprep.subr.mxu0 %v238_v0  ;;  %s208_s26 = scalar_lea.vmem %s139_s25, 128  ;;  %p213_p11 = scmp.lt.s32.totalorder %s139_s25, %s139_s25 }
  0x1e   :  { %157 = vmatpush3.msra.mxu0 %v42_v2  ;;  %p209_p10 = scmp.ne.s32.totalorder %s139_s25, %s208_s26  ;;  %p214_p12 = scmp.lt.s32.totalorder %s208_s26, %s208_s26 }
  0x1f   :  { %159 = vmatmul.mubr.msk.f32.vlgmr.msra.gmra.mxu0 %vm51_vm2, %v41_v3 }
  0x20   :  { %p215_p13 = por %p214_p12, %p213_p11 }
  0x22   :  { %p216_p0 = pnand %p215_p13, %p209_p10 }
  0xdf   :  { %v125_v5 = vpop.f32.mrf.mxu0 }
  0xe0   :  { %v126_v6 = vadd.f32 %v148_v4, %v125_v5 }
  0xe1   :  { %v160_v7 = vpop.f32.mrf.mxu0 }
  0xe2   :  { %v129_v8 = vmax.f32 %v126_v6, 0.5208096 }
  0xe4   :  { %v130_v9 = vmin.f32 %v129_v8, 0.5208096 }
  0xe6   :  { %131 = vst.msk [vmem:[#allocation7] sm:$0xff] %vm51_vm2, %v130_v9 }
  0xe7   :  { %219 = shalt.err (!%p216_p0)
}
  0xe8   :  { %141 = dma.vmem_to_hbm [thread:$0]  %s139_s25, 128, %s276_s3, [#allocation4]  }
  0xe9   :  { %232 = dma.done.wait [#allocation4], 128  }
  0xea   :  { %233 = vsyncadd [#allocation4], 4294967168 }
  0xeb   :  { %145 = vsyncpa [#allocation3], 1 }
  0xec   :  { %146 = vsyncpa [#allocation6], 1 }
  0xed   :  { %147 = vsyncpa [#allocation4], 1 }

</bundles_post_ra>
